<compile_context>
chip_gen: v7x
topology: tpu7x:2x2x1
jax: 0.10.0
libtpu: 0.0.40
codegen_flags: <defaults>
</compile_context>

<pallas_src>
import jax
import jax.numpy as jnp
from jax.experimental import pallas as pl
from jax.experimental.pallas import tpu as pltpu


_UNROLL_CAP = 64  # max statically-unrolled interleave groups per grid step


def _make_interleave_kernel(g, ratio):
    """Kernel for blocks x:(g*ratio, HW), y:(g, HW), o:(g*(ratio+1), HW)."""
    r = ratio

    def kernel(x_ref, y_ref, o_ref):
        if g <= _UNROLL_CAP:
            # Static, fully-unrolled sublane-slice copies (dense blocks).
            for k in range(g):
                base = k * (r + 1)
                o_ref[base:base + r, :] = x_ref[k * r:(k + 1) * r, :]
                o_ref[base + r:base + r + 1, :] = y_ref[k:k + 1, :]
        else:
            # Very large g: in-kernel loop with dynamic sublane slices.
            @pl.loop(0, g)
            def _(k):
                base = k * (r + 1)
                o_ref[pl.ds(base, r), :] = x_ref[pl.ds(k * r, r), :]
                o_ref[pl.ds(base + r, 1), :] = y_ref[pl.ds(k, 1), :]

    return kernel


def _vmem_budgets():
    """(double-buffered working-set budget, scoped vmem_limit_bytes) per chip gen."""
    cap = None
    try:
        cap = getattr(pltpu.get_tpu_info(), "vmem_capacity_bytes", None)
    except Exception:
        cap = None
    if cap is None:
        cap = 64 * 1024 * 1024  # unknown -> assume the smallest (v7x-sized) VMEM
    if cap >= 100 * 1024 * 1024:
        # v5e / v6e: 128 MiB physical VMEM -> large blocks, explicit high limit.
        return 48 * 1024 * 1024, 96 * 1024 * 1024
    # v7x: 64 MiB per TensorCore -> keep double-buffering well under the cap.
    return 36 * 1024 * 1024, 48 * 1024 * 1024


def _cores_per_chip():
    """Best-effort TensorCores-per-chip query (v7x has 2; v5e/v6e have 1)."""
    try:
        d = jax.devices()[0]
        nc = getattr(d, "num_cores", None)
        if nc:
            return int(nc)
        if "v7" in str(getattr(d, "device_kind", "")).lower():
            return 2
    except Exception:
        pass
    return 1


def _choose_groups(n, c2, ratio, hw, itemsize, budget, cores_per_chip):
    """Largest divisor g of c2 whose double-buffered (x, y, out) blocks fit budget."""
    sublane = max(8, 32 // itemsize)            # 8 (f32), 16 (bf16), 32 (int8/fp8)
    lanes = ((hw + 127) // 128) * 128

    def pad_rows(rows):
        return ((rows + sublane - 1) // sublane) * sublane

    def block_bytes(g):
        rows = pad_rows(g * ratio) + pad_rows(g) + pad_rows(g * (ratio + 1))
        return rows * lanes * itemsize

    max_g = c2
    while max_g > 1 and 2 * block_bytes(max_g) > budget:
        max_g -= 1

    # Only on multi-TensorCore chips: keep >= 2 programs on a parallel axis when N == 1.
    if cores_per_chip > 1 and n == 1 and c2 >= 2:
        max_g = min(max_g, c2 // 2)
    max_g = max(1, max_g)

    g = 1
    for d in range(1, c2 + 1):
        if c2 % d == 0 and d <= max_g:
            g = d
    return g


def interleaved_layer(x, y):
    """Pallas implementation of InterleavedLayer.forward(x, y). NCHW layout."""
    n, c1, h, w = x.shape
    ny, c2, hy, wy = y.shape
    assert n == ny and h == hy and w == wy
    assert x.dtype == y.dtype
    ratio = c1 // c2
    assert ratio >= 1 and ratio * c2 == c1, "x channels must be a multiple of y channels"
    c_out = c1 + c2
    hw = h * w
    itemsize = jnp.dtype(x.dtype).itemsize

    budget, vmem_limit = _vmem_budgets()
    g = _choose_groups(n, c2, ratio, hw, itemsize, budget, _cores_per_chip())
    n_blocks = c2 // g

    # Fold g interleave groups into the sublane axis (free reshapes of contiguous NCHW).
    xg = x.reshape(n, n_blocks, g * ratio, hw)
    yg = y.reshape(n, n_blocks, g, hw)

    kernel = _make_interleave_kernel(g, ratio)
    bytes_accessed = 2 * (c1 + c2) * n * hw * itemsize   # read + write, pure copy

    out = pl.pallas_call(
        kernel,
        out_shape=jax.ShapeDtypeStruct((n, n_blocks, g * (ratio + 1), hw), x.dtype),
        grid_spec=pltpu.PrefetchScalarGridSpec(
            num_scalar_prefetch=0,
            grid=(n, n_blocks),
            in_specs=[
                # Last two block dims equal the full array dims -> (8,128) rule always OK.
                pl.BlockSpec((None, None, g * ratio, hw), lambda b, i: (b, i, 0, 0)),
                pl.BlockSpec((None, None, g, hw), lambda b, i: (b, i, 0, 0)),
            ],
            out_specs=pl.BlockSpec((None, None, g * (ratio + 1), hw),
                                   lambda b, i: (b, i, 0, 0)),
        ),
        compiler_params=pltpu.CompilerParams(
            dimension_semantics=("parallel", "parallel"),
            vmem_limit_bytes=vmem_limit,
        ),
        cost_estimate=pl.CostEstimate(flops=0, transcendentals=0,
                                      bytes_accessed=bytes_accessed),
    )(xg, yg)

    return out.reshape(n, c_out, h, w)


def interleaved_layer_ref(x, y):
    """Pure-JAX reference matching the PyTorch module exactly."""
    n, c1, h, w = x.shape
    c2 = y.shape[1]
    ratio = c1 // c2
    xg = x.reshape(n, c2, ratio, h, w)
    yg = y.reshape(n, c2, 1, h, w)
    out = jnp.concatenate([xg, yg], axis=2)  # (n, c2, ratio+1, h, w)
    return out.reshape(n, c1 + c2, h, w)


if __name__ == "__main__":
    key = jax.random.PRNGKey(0)
    kx, ky = jax.random.split(key)

    # Small shapes: batch=2, x has 8 channels, y has 4 channels -> ratio=2,
    # output has 12 channels; spatial 16x16 (HW=256, lane-dense trailing dim).
    x = jax.random.normal(kx, (2, 8, 16, 16), dtype=jnp.float32)
    y = jax.random.normal(ky, (2, 4, 16, 16), dtype=jnp.float32)

    out = jax.block_until_ready(interleaved_layer(x, y))
    ref = interleaved_layer_ref(x, y)

    assert out.shape == ref.shape, (out.shape, ref.shape)
    assert jnp.array_equal(out, ref), "Pallas output does not match reference"

    print("KERNEL_OK")
</pallas_src>

<mosaic_0001>
module attributes {stable_mosaic.version = 11 : i64} {
  func.func @kernel(%arg0: i32, %arg1: i32, %arg2: memref<1x1x8x256xf32, #tpu.memory_space<vmem>>, %arg3: memref<1x1x4x256xf32, #tpu.memory_space<vmem>>, %arg4: memref<1x1x12x256xf32, #tpu.memory_space<vmem>>) attributes {dimension_semantics = [#tpu.dimension_semantics<parallel>, #tpu.dimension_semantics<parallel>], iteration_bounds = array<i64: 2, 1>, scalar_prefetch = 0 : i64, scratch_operands = 0 : i64, tpu.core_type = #tpu.core_type<tc>, window_params = [{transform_indices = @transform_0, window_bounds = array<i64: 1, 1, 8, 256>}, {transform_indices = @transform_1, window_bounds = array<i64: 1, 1, 4, 256>}, {transform_indices = @transform_2, window_bounds = array<i64: 1, 1, 12, 256>}]} {
    %c0 = arith.constant 0 : index
    %c0_0 = arith.constant 0 : index
    %c0_1 = arith.constant 0 : index
    %c0_2 = arith.constant 0 : index
    %0 = vector.load %arg2[%c0, %c0_0, %c0_1, %c0_2] : memref<1x1x8x256xf32, #tpu.memory_space<vmem>>, vector<1x1x2x256xf32>
    %1 = vector.shape_cast %0 : vector<1x1x2x256xf32> to vector<2x256xf32>
    %c0_3 = arith.constant 0 : index
    %c0_4 = arith.constant 0 : index
    %c0_5 = arith.constant 0 : index
    %c0_6 = arith.constant 0 : index
    %2 = vector.load %arg4[%c0_3, %c0_4, %c0_5, %c0_6] : memref<1x1x12x256xf32, #tpu.memory_space<vmem>>, vector<1x1x2x256xf32>
    %3 = vector.shape_cast %2 : vector<1x1x2x256xf32> to vector<2x256xf32>
    %4 = vector.shape_cast %1 : vector<2x256xf32> to vector<1x1x2x256xf32>
    tpu.vector_store %arg4[%c0_3, %c0_4, %c0_5, %c0_6], %4 {strides = array<i32>} : memref<1x1x12x256xf32, #tpu.memory_space<vmem>>, vector<1x1x2x256xf32>,
    %c0_7 = arith.constant 0 : index
    %c0_8 = arith.constant 0 : index
    %c0_9 = arith.constant 0 : index
    %c0_10 = arith.constant 0 : index
    %5 = vector.load %arg3[%c0_7, %c0_8, %c0_9, %c0_10] : memref<1x1x4x256xf32, #tpu.memory_space<vmem>>, vector<1x1x1x256xf32>
    %6 = vector.shape_cast %5 : vector<1x1x1x256xf32> to vector<1x256xf32>
    %c0_11 = arith.constant 0 : index
    %c0_12 = arith.constant 0 : index
    %c2 = arith.constant 2 : index
    %c0_13 = arith.constant 0 : index
    %7 = vector.load %arg4[%c0_11, %c0_12, %c2, %c0_13] : memref<1x1x12x256xf32, #tpu.memory_space<vmem>>, vector<1x1x1x256xf32>
    %8 = vector.shape_cast %7 : vector<1x1x1x256xf32> to vector<1x256xf32>
    %9 = vector.shape_cast %6 : vector<1x256xf32> to vector<1x1x1x256xf32>
    tpu.vector_store %arg4[%c0_11, %c0_12, %c2, %c0_13], %9 {strides = array<i32>} : memref<1x1x12x256xf32, #tpu.memory_space<vmem>>, vector<1x1x1x256xf32>,
    %c0_14 = arith.constant 0 : index
    %c0_15 = arith.constant 0 : index
    %c2_16 = arith.constant 2 : index
    %c0_17 = arith.constant 0 : index
    %10 = vector.load %arg2[%c0_14, %c0_15, %c2_16, %c0_17] : memref<1x1x8x256xf32, #tpu.memory_space<vmem>>, vector<1x1x2x256xf32>
    %11 = vector.shape_cast %10 : vector<1x1x2x256xf32> to vector<2x256xf32>
    %c0_18 = arith.constant 0 : index
    %c0_19 = arith.constant 0 : index
    %c3 = arith.constant 3 : index
    %c0_20 = arith.constant 0 : index
    %12 = vector.load %arg4[%c0_18, %c0_19, %c3, %c0_20] : memref<1x1x12x256xf32, #tpu.memory_space<vmem>>, vector<1x1x2x256xf32>
    %13 = vector.shape_cast %12 : vector<1x1x2x256xf32> to vector<2x256xf32>
    %14 = vector.shape_cast %11 : vector<2x256xf32> to vector<1x1x2x256xf32>
    tpu.vector_store %arg4[%c0_18, %c0_19, %c3, %c0_20], %14 {strides = array<i32>} : memref<1x1x12x256xf32, #tpu.memory_space<vmem>>, vector<1x1x2x256xf32>,
    %c0_21 = arith.constant 0 : index
    %c0_22 = arith.constant 0 : index
    %c1 = arith.constant 1 : index
    %c0_23 = arith.constant 0 : index
    %15 = vector.load %arg3[%c0_21, %c0_22, %c1, %c0_23] : memref<1x1x4x256xf32, #tpu.memory_space<vmem>>, vector<1x1x1x256xf32>
    %16 = vector.shape_cast %15 : vector<1x1x1x256xf32> to vector<1x256xf32>
    %c0_24 = arith.constant 0 : index
    %c0_25 = arith.constant 0 : index
    %c5 = arith.constant 5 : index
    %c0_26 = arith.constant 0 : index
    %17 = vector.load %arg4[%c0_24, %c0_25, %c5, %c0_26] : memref<1x1x12x256xf32, #tpu.memory_space<vmem>>, vector<1x1x1x256xf32>
    %18 = vector.shape_cast %17 : vector<1x1x1x256xf32> to vector<1x256xf32>
    %19 = vector.shape_cast %16 : vector<1x256xf32> to vector<1x1x1x256xf32>
    tpu.vector_store %arg4[%c0_24, %c0_25, %c5, %c0_26], %19 {strides = array<i32>} : memref<1x1x12x256xf32, #tpu.memory_space<vmem>>, vector<1x1x1x256xf32>,
    %c0_27 = arith.constant 0 : index
    %c0_28 = arith.constant 0 : index
    %c4 = arith.constant 4 : index
    %c0_29 = arith.constant 0 : index
    %20 = vector.load %arg2[%c0_27, %c0_28, %c4, %c0_29] : memref<1x1x8x256xf32, #tpu.memory_space<vmem>>, vector<1x1x2x256xf32>
    %21 = vector.shape_cast %20 : vector<1x1x2x256xf32> to vector<2x256xf32>
    %c0_30 = arith.constant 0 : index
    %c0_31 = arith.constant 0 : index
    %c6 = arith.constant 6 : index
    %c0_32 = arith.constant 0 : index
    %22 = vector.load %arg4[%c0_30, %c0_31, %c6, %c0_32] : memref<1x1x12x256xf32, #tpu.memory_space<vmem>>, vector<1x1x2x256xf32>
    %23 = vector.shape_cast %22 : vector<1x1x2x256xf32> to vector<2x256xf32>
    %24 = vector.shape_cast %21 : vector<2x256xf32> to vector<1x1x2x256xf32>
    tpu.vector_store %arg4[%c0_30, %c0_31, %c6, %c0_32], %24 {strides = array<i32>} : memref<1x1x12x256xf32, #tpu.memory_space<vmem>>, vector<1x1x2x256xf32>,
    %c0_33 = arith.constant 0 : index
    %c0_34 = arith.constant 0 : index
    %c2_35 = arith.constant 2 : index
    %c0_36 = arith.constant 0 : index
    %25 = vector.load %arg3[%c0_33, %c0_34, %c2_35, %c0_36] : memref<1x1x4x256xf32, #tpu.memory_space<vmem>>, vector<1x1x1x256xf32>
    %26 = vector.shape_cast %25 : vector<1x1x1x256xf32> to vector<1x256xf32>
    %c0_37 = arith.constant 0 : index
    %c0_38 = arith.constant 0 : index
    %c8 = arith.constant 8 : index
    %c0_39 = arith.constant 0 : index
    %27 = vector.load %arg4[%c0_37, %c0_38, %c8, %c0_39] : memref<1x1x12x256xf32, #tpu.memory_space<vmem>>, vector<1x1x1x256xf32>
    %28 = vector.shape_cast %27 : vector<1x1x1x256xf32> to vector<1x256xf32>
    %29 = vector.shape_cast %26 : vector<1x256xf32> to vector<1x1x1x256xf32>
    tpu.vector_store %arg4[%c0_37, %c0_38, %c8, %c0_39], %29 {strides = array<i32>} : memref<1x1x12x256xf32, #tpu.memory_space<vmem>>, vector<1x1x1x256xf32>,
    %c0_40 = arith.constant 0 : index
    %c0_41 = arith.constant 0 : index
    %c6_42 = arith.constant 6 : index
    %c0_43 = arith.constant 0 : index
    %30 = vector.load %arg2[%c0_40, %c0_41, %c6_42, %c0_43] : memref<1x1x8x256xf32, #tpu.memory_space<vmem>>, vector<1x1x2x256xf32>
    %31 = vector.shape_cast %30 : vector<1x1x2x256xf32> to vector<2x256xf32>
    %c0_44 = arith.constant 0 : index
    %c0_45 = arith.constant 0 : index
    %c9 = arith.constant 9 : index
    %c0_46 = arith.constant 0 : index
    %32 = vector.load %arg4[%c0_44, %c0_45, %c9, %c0_46] : memref<1x1x12x256xf32, #tpu.memory_space<vmem>>, vector<1x1x2x256xf32>
    %33 = vector.shape_cast %32 : vector<1x1x2x256xf32> to vector<2x256xf32>
    %34 = vector.shape_cast %31 : vector<2x256xf32> to vector<1x1x2x256xf32>
    tpu.vector_store %arg4[%c0_44, %c0_45, %c9, %c0_46], %34 {strides = array<i32>} : memref<1x1x12x256xf32, #tpu.memory_space<vmem>>, vector<1x1x2x256xf32>,
    %c0_47 = arith.constant 0 : index
    %c0_48 = arith.constant 0 : index
    %c3_49 = arith.constant 3 : index
    %c0_50 = arith.constant 0 : index
    %35 = vector.load %arg3[%c0_47, %c0_48, %c3_49, %c0_50] : memref<1x1x4x256xf32, #tpu.memory_space<vmem>>, vector<1x1x1x256xf32>
    %36 = vector.shape_cast %35 : vector<1x1x1x256xf32> to vector<1x256xf32>
    %c0_51 = arith.constant 0 : index
    %c0_52 = arith.constant 0 : index
    %c11 = arith.constant 11 : index
    %c0_53 = arith.constant 0 : index
    %37 = vector.load %arg4[%c0_51, %c0_52, %c11, %c0_53] : memref<1x1x12x256xf32, #tpu.memory_space<vmem>>, vector<1x1x1x256xf32>
    %38 = vector.shape_cast %37 : vector<1x1x1x256xf32> to vector<1x256xf32>
    %39 = vector.shape_cast %36 : vector<1x256xf32> to vector<1x1x1x256xf32>
    tpu.vector_store %arg4[%c0_51, %c0_52, %c11, %c0_53], %39 {strides = array<i32>} : memref<1x1x12x256xf32, #tpu.memory_space<vmem>>, vector<1x1x1x256xf32>,
    return
  }
  func.func @transform_0(%arg0: i32, %arg1: i32) -> (i32, i32, i32, i32) {
    %c0_i32 = arith.constant 0 : i32
    %c0_i32_0 = arith.constant 0 : i32
    %c0_i32_1 = arith.constant 0 : i32
    return %arg0, %arg1, %c0_i32, %c0_i32_0 : i32, i32, i32, i32
  }
  func.func @transform_1(%arg0: i32, %arg1: i32) -> (i32, i32, i32, i32) {
    %c0_i32 = arith.constant 0 : i32
    %c0_i32_0 = arith.constant 0 : i32
    %c0_i32_1 = arith.constant 0 : i32
    return %arg0, %arg1, %c0_i32, %c0_i32_0 : i32, i32, i32, i32
  }
  func.func @transform_2(%arg0: i32, %arg1: i32) -> (i32, i32, i32, i32) {
    %c0_i32 = arith.constant 0 : i32
    %c0_i32_0 = arith.constant 0 : i32
    %c0_i32_1 = arith.constant 0 : i32
    return %arg0, %arg1, %c0_i32, %c0_i32_0 : i32, i32, i32, i32
  }
}

</mosaic_0001>

<bundles_post_ra>
// kernel: tpu_custom_call.1
= control target key start
LH: loop header
LB: loop body
LE: loop exit
PB: predicated region body
PF: predicated region fallthrough
CT: control target
= control target key end

     0   :  { %7 = vsyncpa [#allocation3], 0  ;;  %s839_s0 = inlined_call_operand.hbm [shape: f32[2,1,8,256], index: 0, kind: input, shape index: {}]   ;;  %s840_s1 = inlined_call_operand.hbm [shape: f32[2,1,4,256], index: 1, kind: input, shape index: {}]   ;;  %s841_s2 = inlined_call_operand.vmem [shape: f32[2,1,12,256], index: 2, kind: output, shape index: {}]  }
   0x1   :  { %9 = vsyncpa [#allocation3 + $0x1], 0 }
   0x2   :  { %10 = vsyncpa [#allocation5], 0 }
   0x3   :  { %12 = vsyncpa [#allocation5 + $0x1], 0  ;;  %s631_s9 = smov 0   ;;  %s633_s10 = smov 0  }
   0x4   :  { %s635_s11 = smov 0   ;;  %s637_s12 = smov 0  }
   0x5   :  { %s639_s13 = smov 0   ;;  %s641_s14 = smov 0  }
   0x6 LB: > { %s411_s15 = sadd.s32 4294967295, %s612_s14   ;;  %s30_s16 = sadd.s32 1, %s608_s13  ;;  %s612_s14 = sphi %s641_s14, %s18_s14   ;;  %s608_s13 = sphi %s639_s13, %s857_s13   ;;  %s604_s12 = sphi %s637_s12, %s856_s12   ;;  %s600_s11 = sphi %s635_s11, %s855_s11   ;;  %s596_s10 = sphi %s633_s10, %s854_s10   ;;  %s592_s9 = sphi %s631_s9, %s853_s9  }
   0x7   : > { %p32_p0 = scmp.ge.s32.totalorder %s30_s16, 2  ;;  %s39_s17 = sadd.s32 1, %s600_s11 }
   0x8   : > { %p46_p1 = scmp.ne.s32.totalorder %s600_s11, %s596_s10  ;;  %p47_p2 = scmp.eq.s32.totalorder %s612_s14, 0 }
   0x9   : > { %s859_s16 = smov (%p32_p0, %s30_s16), 0  ;;  %p52_p4 = scmp.ne.s32.totalorder %s596_s10, %s592_s9 }
   0xa   : > { %p667_p3 = por %p47_p2, %p46_p1  ;;  %s34_s19 = ssub.s32 %s608_s13, %s859_s16 }
   0xb   : > { %p53_p5 = scmp.eq.s32.totalorder %s411_s15, 0  ;;  %p37_p6 = scmp.eq.s32.totalorder %s34_s19, 0 }
   0xc   : > { %p449_p8 = scmp.lt.s32.totalorder %s612_s14, 2  ;;  %s683_s22 = sand.u32 1, %s600_s11  }
   0xd   : > { %p674_p7 = por %p53_p5, %p52_p4  ;;  %s435_s23 = sshll.u32 %s608_s13, 8 }
   0xe   : > { %s680_s21 = scalar_select %p37_p6, %s600_s11, %s39_s17  }
   0xf   : > { %s844_s20 = scalar_select %p674_p7, 1, 0 }
  0x10   : > { %s415_s24 = sshll.u32 %s683_s22, 4  ;;  %s690_s27 = scalar_lea.hbm %s839_s0, %s435_s23 }
  0x11   : > { %s136_s28 = scalar_lea.vmem [#allocation2], %s415_s24  ;;  %p694_p9 = pnand %p449_p8, %p667_p3 }
  0x12   : > { %s146_s29 = sshll.u32 %s136_s28, 4  ;;  %s133_s3 = scalar_lea.sflag [#allocation3], %s683_s22  ;;  %s698_s29 = int_to_ptr.vmem [resolvable:$true] %s146_s29 }
  0x13   : > { %s498_s4 = scalar_lea.hbm %s690_s27, 256  ;;  %p500_p13 = pneg %p694_p9 }
  0x14   : > { %p499_p12 = scmp.ne.s32.totalorder %s690_s27, %s498_s4  ;;  %s503_s7 = scalar_lea.hbm %s839_s0, 512 }
  0x15   : > { %p504_p2 = scmp.lt.u32.totalorder %s690_s27, %s839_s0  ;;  %p505_p3 = scmp.lt.u32.totalorder %s503_s7, %s498_s4 }
  0x16   : > { %p501_p0 = pnand %p500_p13, %p499_p12  ;;  %p507_p5 = scmp.lt.u32.totalorder %s498_s4, %s690_s27 }
  0x17   : > { %p506_p4 = por %p505_p3, %p504_p2 }
  0x18   : > { %p502_p1 = pneg %p501_p0 }
  0x19   : > { %p508_p6 = por %p507_p5, %p506_p4 }
  0x1b   : > { %p509_p8 = pnand %p508_p6, %p502_p1 }
  0x1d   : > { %512 = shalt.err (!%p509_p8)
}
  0x1e   : > { %s513_s15 = scalar_lea.vmem %s698_s29, 256  ;;  %s614_s17 = smov [#allocation2]  }
  0x1f   : > { %p514_p12 = scmp.ne.s32.totalorder %s698_s29, %s513_s15  ;;  %s518_s18 = sshll.u32 %s614_s17, 4  ;;  %s519_s18 = int_to_ptr.vmem [resolvable:$false] %s518_s18 }
  0x20   : > { %s520_s19 = scalar_lea.vmem %s519_s18, 512  ;;  %p521_p11 = scmp.lt.s32.totalorder %s698_s29, %s519_s18 }
  0x21   : > { %p516_p0 = pnand %p514_p12, %p500_p13  ;;  %p522_p2 = scmp.lt.s32.totalorder %s520_s19, %s513_s15 }
  0x23   : > { %p517_p10 = pneg %p516_p0  ;;  %p523_p3 = por %p522_p2, %p521_p11 }
  0x25   : > { %p524_p4 = pnand %p523_p3, %p517_p10 }
  0x27   : > { %527 = shalt.err (!%p524_p4)
}
  0x28   : > { %445 = dma.hbm_to_vmem [thread:$0]  (!%p694_p9), %s690_s27, 256, %s698_s29, %s133_s3  }
  0x29   : > { %p846_p1 = scmp.lt.s32.totalorder %s612_s14, 3  ;;  %p847_p5 = scmp.ge.s32.totalorder %s612_s14, 1 }
  0x2a   : > { %s418_s24 = sshll.u32 %s683_s22, 3  ;;  %s436_s25 = sshll.u32 %s608_s13, 7 }
  0x2b   : > { %p732_p6 = pnand %p847_p5, %p846_p1  ;;  %s741_s4 = scalar_lea.hbm %s840_s1, %s436_s25 }
  0x2c   : > { %s157_s5 = scalar_lea.vmem [#allocation4], %s418_s24  ;;  %s154_s27 = scalar_lea.sflag [#allocation5], %s683_s22 }
  0x2d   : > { %s848_s23 = scalar_select %p732_p6, 1, 0 }
  0x2e   : > { %s167_s6 = sshll.u32 %s157_s5, 4  ;;  %s528_s29 = scalar_lea.hbm %s741_s4, 128  ;;  %s168_s6 = int_to_ptr.vmem [resolvable:$true] %s167_s6 }
  0x2f   : > { %p529_p10 = scmp.ne.s32.totalorder %s741_s4, %s528_s29  ;;  %s533_s8 = scalar_lea.hbm %s840_s1, 256 }
  0x30   : > { %p534_p12 = scmp.lt.u32.totalorder %s741_s4, %s840_s1  ;;  %p535_p0 = scmp.lt.u32.totalorder %s533_s8, %s528_s29 }
  0x31   : > { %p531_p11 = pnand %p529_p10, %p500_p13  ;;  %p537_p3 = scmp.lt.u32.totalorder %s528_s29, %s741_s4 }
  0x32   : > { %p536_p2 = por %p535_p0, %p534_p12 }
  0x33   : > { %p532_p8 = pneg %p531_p11 }
  0x34   : > { %p538_p4 = por %p537_p3, %p536_p2 }
  0x36   : > { %p539_p1 = pnand %p538_p4, %p532_p8 }
  0x38   : > { %542 = shalt.err (!%p539_p1)
}
  0x39   : > { %s543_s22 = scalar_lea.vmem %s168_s6, 128  ;;  %s615_s17 = smov [#allocation4]  }
  0x3a   : > { %p544_p5 = scmp.ne.s32.totalorder %s168_s6, %s543_s22  ;;  %s548_s18 = sshll.u32 %s615_s17, 4  ;;  %s549_s18 = int_to_ptr.vmem [resolvable:$false] %s548_s18 }
  0x3b   : > { %s550_s19 = scalar_lea.vmem %s549_s18, 256  ;;  %p551_p7 = scmp.lt.s32.totalorder %s168_s6, %s549_s18 }
  0x3c   : > { %p546_p10 = pnand %p544_p5, %p500_p13  ;;  %p552_p6 = scmp.lt.s32.totalorder %s550_s19, %s543_s22 }
  0x3e   : > { %p547_p11 = pneg %p546_p10  ;;  %p553_p0 = por %p552_p6, %p551_p7 }
  0x40   : > { %p554_p12 = pnand %p553_p0, %p547_p11 }
  0x42   : > { %557 = shalt.err (!%p554_p12)
}
  0x43   : > { %448 = dma.hbm_to_vmem [thread:$0]  (!%p694_p9), %s741_s4, 128, %s168_s6, %s154_s27  }
  0x44   : > { %p849_p8 = scmp.ne.s32.totalorder %s848_s23, 0 }
  0x45   : > { %s178_s24 = sand.u32 (!%p849_p8), 1, %s596_s10   ;;  %p850_p13 = scmp.ne.s32.totalorder (!%p849_p8), %s844_s20, 0 }
  0x46   : > { %176 = sbr.rel (%p849_p8) target bundleno = 93 (0x5d), region = 28  ;;  %s422_s25 = sshll.u32 (!%p849_p8), %s178_s24, 4 }
  0x47   : > { %s179_s26 = scalar_lea.sflag (!%p849_p8), [#allocation3], %s178_s24  ;;  %s766_s28 = scalar_lea.vmem (!%p849_p8), [#allocation2], %s422_s25 }
  0x4d   : > { %583 = dma.done.wait (%p850_p13), %s179_s26, 256  }
  0x4e   : > { %585 = vsyncadd (%p850_p13), %s179_s26, 4294967040  ;;  %s423_s5 = sshll.u32 %s178_s24, 3  ;;  %s188_s30 = scalar_lea.sflag [#allocation5], %s178_s24 }
  0x4f   : > { %s772_s29 = scalar_lea.vmem [#allocation4], %s423_s5 }
  0x50   : > { %587 = dma.done.wait (%p850_p13), %s188_s30, 128  }
  0x51   : > { %589 = vsyncadd (%p850_p13), %s188_s30, 4294967168  ;;  %p221_p7 = scmp.lt.s32.totalorder %s604_s12, 1  ;;  %v235_v0 = vlaneseq  ;;  %v230_v2 = vld [vmem:[%s766_s28] sm:$0x3]  ;;  %v231_v3 = vld [vmem:[%s766_s28 + $0x8] sm:$0x3] }
  0x52   : > { %v242_v4 = vld [vmem:[%s766_s28] sm:$0xc]  ;;  %v234_v5 = vld [vmem:[%s772_s29] ss:$4 sm:$0x3] }
  0x53   : > { %s861_s12 = smov (!%p221_p7, %s604_s12), 1  ;;  %vm785_vm0 = vcmp.lt.s32.totalorder %v235_v0, 256  ;;  %v246_v6 = vrot.slane %v242_v4, 7  ;;  %v243_v7 = vld [vmem:[%s766_s28 + $0x8] sm:$0xc] }
  0x54   : > { %s437_s23 = sshll.u32 %s861_s12, 5  ;;  %v247_v8 = vrot.slane %v243_v7, 7  ;;  %v427_v9 = vld [vmem:[%s772_s29 + $0x1] ss:$4 sm:$0x3] }
  0x55   : > { %s783_s27 = scalar_lea.vmem %s841_s2, %s437_s23  ;;  %v257_v10 = vld [vmem:[%s766_s28] sm:$0x30]  ;;  %v258_v12 = vld [vmem:[%s766_s28 + $0x8] sm:$0x30]  ;;  %v272_v15 = vld [vmem:[%s766_s28] sm:$0xc0] }
  0x56   : > { %232 = vst [vmem:[%s783_s27] sm:$0x3] %v230_v2  ;;  %233 = vst [vmem:[%s783_s27 + $0x8] sm:$0x3] %v231_v3  ;;  %v261_v11 = vrot.slane %v257_v10, 6  ;;  %v262_v14 = vrot.slane %v258_v12, 6  ;;  %v276_v17 = vrot.slane %v272_v15, 5 }
  0x57   : > { %426 = vst.msk [vmem:[%s783_s27 + $0x2] ss:$8 sm:$0x3] %vm785_vm0, %v234_v5  ;;  %250 = vst [vmem:[%s783_s27] sm:$0x18] %v246_v6  ;;  %v273_v16 = vld [vmem:[%s766_s28 + $0x8] sm:$0xc0] }
  0x58   : > { %428 = vst.msk [vmem:[%s783_s27 + $0x5] ss:$8 sm:$0x3] %vm785_vm0, %v427_v9  ;;  %v429_v13 = vld [vmem:[%s772_s29 + $0x2] ss:$4 sm:$0x3] }
  0x59   : > { %251 = vst [vmem:[%s783_s27 + $0x8] sm:$0x18] %v247_v8  ;;  %430 = vst.msk [vmem:[%s783_s27 + $0x10] ss:$8 sm:$0x3] %vm785_vm0, %v429_v13  ;;  %v277_v18 = vrot.slane %v273_v16, 5 }
  0x5a   : > { %265 = vst [vmem:[%s783_s27] sm:$0xc0] %v261_v11  ;;  %v431_v19 = vld [vmem:[%s772_s29 + $0x3] ss:$4 sm:$0x3]  ;;  %266 = vst [vmem:[%s783_s27 + $0x8] sm:$0xc0] %v262_v14 }
  0x5b   : > { %432 = vst.msk [vmem:[%s783_s27 + $0x13] ss:$8 sm:$0x3] %vm785_vm0, %v431_v19  ;;  %280 = vst [vmem:[%s783_s27 + $0x10] sm:$0x6] %v276_v17 }
  0x5c   : > { %281 = vst [vmem:[%s783_s27 + $0x18] sm:$0x6] %v277_v18 }
  0x5d PF: > { %s18_s14 = sadd.s32 1, %s612_s14   ;;  %s853_s9 = smov %s596_s10 }
  0x5e   : > { %p15_p9 = scmp.ge.s32.totalorder %s18_s14, 4   ;;  %s854_s10 = smov %s600_s11 }
  0x5f   : > { %s855_s11 = smov %s680_s21  ;;  %s856_s12 = smov %s608_s13 }
  0x60   : > { %s857_s13 = smov %s859_s16  ;;  %17 = sbr.rel (!%p15_p9) target bundleno = 6 (0x6), region = 88 }
  0x67   :  { %316 = vsyncpa [#allocation3], 1 }
  0x68   :  { %318 = vsyncpa [#allocation3 + $0x1], 1 }
  0x69   :  { %319 = vsyncpa [#allocation5], 1 }
  0x6a   :  { %321 = vsyncpa [#allocation5 + $0x1], 1 }

</bundles_post_ra>
